<compile_context>
chip_gen: v6e
topology: v6e:2x2x1
jax: 0.10.0
libtpu: 0.0.40
codegen_flags: <defaults>
</compile_context>

<pallas_src>
import jax
import jax.numpy as jnp
from jax.experimental import pallas as pl
from jax.experimental.pallas import tpu as pltpu


_LANE = 128
_SUBLANE = 8
_MAX_TILE_P = 8192               # lane-axis slab when P is large (multiple of 128)
_MAX_TILE_V = 4096               # sanity cap on sublane-axis tile
_BUF_BYTES = 8 * 1024 * 1024     # per pipeline buffer (Pallas double-buffers)
_VMEM_LIMIT = 48 * 1024 * 1024   # fits v7x's 64 MiB physical VMEM with headroom


def _round_up(x, m):
    return ((x + m - 1) // m) * m


def _choose_tiles(vocab_size, num_embeddings, itemsize):
    """Pick (tile_v, tile_p) targeting ~_BUF_BYTES per pipeline buffer."""
    # Lane (reduction) axis: whole rows when modest -> one contiguous DMA per
    # block and a single reduction step; otherwise a fixed lane-aligned slab.
    tile_p = num_embeddings if num_embeddings <= _MAX_TILE_P else _MAX_TILE_P

    # Sublane (vocab) axis: as many rows as fit the budget, multiple of 8.
    rows = _BUF_BYTES // max(1, tile_p * itemsize)
    rows = max(_SUBLANE, (rows // _SUBLANE) * _SUBLANE)
    rows = min(rows, _MAX_TILE_V)
    tile_v = vocab_size if vocab_size <= rows else rows

    # v7x megacore: keep >= 2 iterations on the parallel axis when V allows it.
    if vocab_size > _SUBLANE and pl.cdiv(vocab_size, tile_v) < 2:
        tile_v = min(tile_v, _round_up(pl.cdiv(vocab_size, 2), _SUBLANE))
    return tile_v, tile_p


def _make_fold_kernel(p_total, tile_p, needs_mask):
    """VPU kernel for lane-aligned tiles (tile_p % 128 == 0)."""
    n_chunks = tile_p // _LANE

    def kernel(w_ref, o_ref, acc_ref):
        # w_ref:   (tile_v, tile_p) weight tile in native dtype.
        # o_ref:   (tile_v, 1) output tile, resident across the k axis.
        # acc_ref: (tile_v, 128) lane-dense f32 accumulator (VMEM scratch).
        k = pl.program_id(1)

        @pl.when(k == 0)
        def _init():
            acc_ref[...] = jnp.zeros_like(acc_ref)

        base = k * tile_p
        lane_iota = jax.lax.broadcasted_iota(jnp.int32, (1, _LANE), 1)

        part = None
        for c in range(n_chunks):
            col0 = c * _LANE
            pos_idx = base + col0 + lane_iota                      # (1, 128) int32
            pos_c = pos_idx.astype(jnp.float32)                    # exact up to 2^24
            strip = w_ref[:, col0:col0 + _LANE]                    # static ref slice
            prod_c = strip.astype(jnp.float32) * pos_c             # (tile_v, 128)
            if needs_mask:
                # Ragged last reduction block: padded weight data is unspecified,
                # so zero every out-of-range column's contribution.
                prod_c = jnp.where(pos_idx < p_total, prod_c, 0.0)
            part = prod_c if part is None else part + prod_c
        acc_ref[...] += part

        @pl.when(k == pl.num_programs(1) - 1)
        def _finish():
            o_ref[...] = jnp.sum(
                acc_ref[...], axis=-1, keepdims=True
            ).astype(o_ref.dtype)

    return kernel


def _rowsum_kernel(w_ref, o_ref):
    """Fallback for full-row blocks whose width is not lane aligned (small/odd P)."""
    tp = w_ref.shape[1]
    pos = jax.lax.broadcasted_iota(jnp.int32, (1, tp), 1).astype(jnp.float32)
    prod = w_ref[...].astype(jnp.float32) * pos
    o_ref[...] = jnp.sum(prod, axis=-1, keepdims=True).astype(o_ref.dtype)


def positional_embedding_forward(x, weight, emb_type="absolute"):
    """x: (N, C, S, W) array (only S = x.shape[2] is used). weight: (V, P)."""
    if emb_type != "absolute":
        raise TypeError(f"do not support emb_type={emb_type!r} of positional embedding")
    seq_len = x.shape[2]
    vocab_size, num_embeddings = weight.shape
    if seq_len != num_embeddings:
        raise ValueError(
            "pos @ weight.T requires seq_len == num_embeddings "
            f"(got seq_len={seq_len}, num_embeddings={num_embeddings})"
        )

    itemsize = jnp.dtype(weight.dtype).itemsize
    out_dtype = weight.dtype  # NOTE: output dtype intentionally follows the weight.
    tile_v, tile_p = _choose_tiles(vocab_size, num_embeddings, itemsize)
    grid_v = pl.cdiv(vocab_size, tile_v)

    cost = pl.CostEstimate(
        flops=2 * vocab_size * num_embeddings,
        transcendentals=0,
        bytes_accessed=vocab_size * num_embeddings * itemsize + vocab_size * itemsize,
    )

    if tile_p % _LANE == 0:
        # Main path: lane-aligned reduction tiles, lane-dense VPU accumulation.
        grid_p = pl.cdiv(num_embeddings, tile_p)
        needs_mask = (num_embeddings % tile_p) != 0
        kernel = _make_fold_kernel(num_embeddings, tile_p, needs_mask)
        out2d = pl.pallas_call(
            kernel,
            out_shape=jax.ShapeDtypeStruct((vocab_size, 1), out_dtype),
            grid_spec=pltpu.PrefetchScalarGridSpec(
                num_scalar_prefetch=0,
                grid=(grid_v, grid_p),
                in_specs=[pl.BlockSpec((tile_v, tile_p), lambda i, k: (i, k))],
                # Same block across k -> resident output; finalized at last k.
                out_specs=pl.BlockSpec((tile_v, 1), lambda i, k: (i, 0)),
                scratch_shapes=[pltpu.VMEM((tile_v, _LANE), jnp.float32)],
            ),
            compiler_params=pltpu.CompilerParams(
                dimension_semantics=("parallel", "arbitrary"),
                vmem_limit_bytes=_VMEM_LIMIT,
            ),
            cost_estimate=cost,
        )(weight)
    else:
        # Small / non-lane-aligned P: whole rows per block, single reduction step.
        out2d = pl.pallas_call(
            _rowsum_kernel,
            out_shape=jax.ShapeDtypeStruct((vocab_size, 1), out_dtype),
            grid_spec=pltpu.PrefetchScalarGridSpec(
                num_scalar_prefetch=0,
                grid=(grid_v,),
                in_specs=[pl.BlockSpec((tile_v, num_embeddings), lambda i: (i, 0))],
                out_specs=pl.BlockSpec((tile_v, 1), lambda i: (i, 0)),
            ),
            compiler_params=pltpu.CompilerParams(
                dimension_semantics=("parallel",),
                vmem_limit_bytes=_VMEM_LIMIT,
            ),
            cost_estimate=cost,
        )(weight)

    return out2d.reshape(vocab_size)  # match PyTorch 1-D result (vocab_size,)


def _ref_forward(weight, seq_len):
    # Pure-VPU reference (avoids MXU default-precision surprises in the check).
    pos = jnp.arange(seq_len, dtype=jnp.float32)
    return jnp.sum(weight.astype(jnp.float32) * pos[None, :], axis=1).astype(weight.dtype)


if __name__ == "__main__":
    key = jax.random.PRNGKey(0)
    kx, kw1, kw2 = jax.random.split(key, 3)

    # Shapes implied by the module: x is (N, C, S, W); forward only uses S, and
    # pos @ weight.T requires seq_len == num_embeddings.
    batch, channels, seq, width = 2, 4, 16, 16
    num_embeddings = seq          # 16
    vocab_size = 32

    x = jax.random.normal(kx, (batch, channels, seq, width), dtype=jnp.float32)

    # 1) Module-faithful parameters: nn.Parameter(torch.ones(V, P)).
    weight = jnp.ones((vocab_size, num_embeddings), dtype=jnp.float32)
    out = jax.block_until_ready(positional_embedding_forward(x, weight))
    assert out.shape == (vocab_size,)
    assert jnp.allclose(out, _ref_forward(weight, seq), atol=1e-5, rtol=1e-5)

    # 2) Random weights, lane-aligned P, ragged V edge (lane-fold kernel path).
    v2, p2 = 36, 256
    w2 = jax.random.normal(kw1, (v2, p2), dtype=jnp.float32)
    x2 = jnp.zeros((1, 1, p2, 1), dtype=jnp.float32)
    out2 = jax.block_until_ready(positional_embedding_forward(x2, w2))
    assert jnp.allclose(out2, _ref_forward(w2, p2), atol=1e-2, rtol=1e-4)

    # 3) Random weights, multi-step ragged reduction (k grid + edge masking).
    v3, p3 = 16, 9000
    w3 = jax.random.normal(kw2, (v3, p3), dtype=jnp.float32)
    x3 = jnp.zeros((1, 1, p3, 1), dtype=jnp.float32)
    out3 = jax.block_until_ready(positional_embedding_forward(x3, w3))
    assert jnp.allclose(out3, _ref_forward(w3, p3), atol=1.0, rtol=1e-4)

    print("KERNEL_OK")
</pallas_src>

<mosaic_0001>
module attributes {stable_mosaic.version = 11 : i64} {
  func.func @_rowsum_kernel(%arg0: i32, %arg1: memref<16x16xf32, #tpu.memory_space<vmem>>, %arg2: memref<16x1xf32, #tpu.memory_space<vmem>>) attributes {dimension_semantics = [#tpu.dimension_semantics<parallel>], iteration_bounds = array<i64: 2>, scalar_prefetch = 0 : i64, scratch_operands = 0 : i64, tpu.core_type = #tpu.core_type<tc>, window_params = [{transform_indices = @transform_0, window_bounds = array<i64: 16, 16>}, {transform_indices = @transform_1, window_bounds = array<i64: 16, 1>}]} {
    %0 = tpu.iota {dimensions = array<i32: 1>} : vector<1x16xi32>
    %1 = arith.sitofp %0 : vector<1x16xi32> to vector<1x16xf32>
    %c0 = arith.constant 0 : index
    %c0_0 = arith.constant 0 : index
    %2 = vector.load %arg1[%c0, %c0_0] : memref<16x16xf32, #tpu.memory_space<vmem>>, vector<16x16xf32>
    %3 = vector.broadcast %1 : vector<1x16xf32> to vector<16x16xf32>
    %4 = arith.mulf %2, %3 : vector<16x16xf32>
    %cst = arith.constant dense<0.000000e+00> : vector<16xf32>
    %5 = vector.multi_reduction <add>, %4, %cst [1] : vector<16x16xf32> to vector<16xf32>
    %6 = vector.shape_cast %5 : vector<16xf32> to vector<16x1xf32>
    %c0_1 = arith.constant 0 : index
    %c0_2 = arith.constant 0 : index
    %7 = vector.load %arg2[%c0_1, %c0_2] : memref<16x1xf32, #tpu.memory_space<vmem>>, vector<16x1xf32>
    tpu.vector_store %arg2[%c0_1, %c0_2], %6 {strides = array<i32>} : memref<16x1xf32, #tpu.memory_space<vmem>>, vector<16x1xf32>,
    return
  }
  func.func @transform_0(%arg0: i32) -> (i32, i32) {
    %c0_i32 = arith.constant 0 : i32
    %c0_i32_0 = arith.constant 0 : i32
    return %arg0, %c0_i32 : i32, i32
  }
  func.func @transform_1(%arg0: i32) -> (i32, i32) {
    %c0_i32 = arith.constant 0 : i32
    %c0_i32_0 = arith.constant 0 : i32
    return %arg0, %c0_i32 : i32, i32
  }
}

</mosaic_0001>

<bundles_post_ra>
// kernel: tpu_custom_call.1
= control target key start
LH: loop header
LB: loop body
LE: loop exit
PB: predicated region body
PF: predicated region fallthrough
CT: control target
= control target key end

     0   :  { %s230_s6 = smov 0   ;;  %s247_s0 = inlined_call_operand.vmem [shape: f32[32,16], index: 0, kind: input, shape index: {}]   ;;  %s248_s1 = inlined_call_operand.vmem [shape: f32[32,1], index: 1, kind: output, shape index: {}]  }
   0x1 LB: > { %s193_s7 = sadd.s32 4294967295, %s218_s6   ;;  %p197_p0 = scmp.ge.s32.totalorder %s218_s6, 1  ;;  %s218_s6 = sphi %s230_s6, %s11_s6  }
   0x2   : > { %p88_p1 = scmp.lt.s32.totalorder %s218_s6, 3 }
   0x4   : > { %p89_p2 = pnand %p197_p0, %p88_p1 }
   0x5   : > { %s198_s8 = sshll.u32 (!%p89_p2), %s193_s7, 1 }
   0x6   : > { %92 = sbr.rel (%p89_p2) target bundleno = 163 (0xa3), region = 24  ;;  %p109_p3 = scmp.lt.s32.totalorder (!%p89_p2), %s198_s8, 3 }
   0xb   : > { %v120_v0 = vlaneseq  ;;  %s250_s8 = smov (!%p109_p3, %s198_s8), 3  ;;  %vm127_vm0 = vcmask 130048   ;;  %vm134_vm1 = vcmask 7168  }
   0xc   : > { %s199_s9 = sshll.u32 %s250_s8, 3 }
   0xd   : > { %v121_v1 = vand.u32 127, %v120_v0  ;;  %s112_s12 = scalar_lea.vmem %s247_s0, %s199_s9  ;;  %s118_s15 = scalar_lea.vmem %s248_s1, %s199_s9 }
   0xe   : > { %v123_v3 = vld [vmem:[%s112_s12] sm:$0xff]  ;;  %v124_v4 = vld [vmem:[%s112_s12 + $0x8] sm:$0xff] }
   0xf   : > { %v122_v2 = vcvt.s32.f32 %v121_v1 }
  0x11   : > { %v125_v5 = vmul.f32 %v123_v3, %v122_v2  ;;  %v126_v6 = vmul.f32 %v124_v4, %v122_v2 }
  0x13   : > { %v128_v7 = vsel %vm127_vm0, %v125_v5, 0.0  ;;  %v131_v8 = vsel %vm127_vm0, %v126_v6, 0.0 }
  0x14   : > { %129 = vadd.xlane.f32.xlu0 %v128_v7 }
  0x18   : > { %132 = vadd.xlane.f32.xlu0 %v131_v8 }
  0x9d   : > { %v130_v9 = vpop.xlane.xlu0 %129 }
  0x9e   : > { %135 = vst.msk [vmem:[%s118_s15] sm:$0xff] %vm134_vm1, %v130_v9 }
  0xa1   : > { %v133_v10 = vpop.xlane.xlu0 %132 }
  0xa2   : > { %136 = vst.msk [vmem:[%s118_s15 + $0x8] sm:$0xff] %vm134_vm1, %v133_v10 }
  0xa3 PF: > { %s11_s6 = sadd.s32 1, %s218_s6  }
  0xa4   : > { %p8_p4 = scmp.ge.s32.totalorder %s11_s6, 4  }
  0xa6   :  { %10 = sbr.rel (!%p8_p4) target bundleno = 1 (0x1), region = 54 }

</bundles_post_ra>
